<compile_context>
chip_gen: v5e
topology: v5e:2x2
jax: 0.10.0
libtpu: 0.0.40
codegen_flags: <defaults>
</compile_context>

<pallas_src>
import math

import jax
import jax.numpy as jnp
from jax.experimental import pallas as pl
from jax.experimental.pallas import tpu as pltpu


F_IN = 65          # model input features
F_PAD = 128        # padded feature dim (lane-dense bf16 rows, clean MXU K)
H1, H2, H3 = 128, 64, 32
BN_EPS = 1e-5


def _round_up(n, m):
    return ((n + m - 1) // m) * m


def _mlp_kernel(x_ref,
                w1_ref, t1_ref,
                w2_ref, t2_ref,
                w3_ref, t3_ref,
                w4_ref, b4_ref,
                o_ref):
    """One batch tile: (fc1+bn1+relu) -> (fc2+bn2+relu) -> (fc3+bn3+relu) -> fc_out.

    BN (eval mode) is pre-folded in the wrapper: gamma/sqrt(var+eps) is folded
    into the bf16 weights, the remaining per-feature shift is added in f32.
    Dropout = identity (eval mode).
    """
    x = x_ref[...]                                                 # (TB, 128) bf16

    h = jnp.dot(x, w1_ref[...], preferred_element_type=jnp.float32)
    h = jnp.maximum(h + t1_ref[...], 0.0)

    h = jnp.dot(h.astype(jnp.bfloat16), w2_ref[...],
                preferred_element_type=jnp.float32)
    h = jnp.maximum(h + t2_ref[...], 0.0)

    h = jnp.dot(h.astype(jnp.bfloat16), w3_ref[...],
                preferred_element_type=jnp.float32)
    h = jnp.maximum(h + t3_ref[...], 0.0)                          # (TB, 32) f32

    # fc_out (N=1): broadcast multiply + lane reduce instead of a 1-column MXU pass.
    out = jnp.sum(h * w4_ref[...], axis=-1, keepdims=True) + b4_ref[...]
    o_ref[...] = out.astype(o_ref.dtype)


def mlp_classifier_forward(x, prepared_params, tile_b=512):
    """x: (B, ...) flattening to 65 features.  Returns (B, 1) float32."""
    B = x.shape[0]
    x2d = x.reshape(B, -1).astype(jnp.float32)                     # x.view(B, -1)
    assert x2d.shape[1] == F_IN, x2d.shape

    # Pad features 65 -> 128 (zero columns) and cast to bf16: 256B aligned rows.
    x_pad = jnp.pad(x2d, ((0, 0), (0, F_PAD - F_IN))).astype(jnp.bfloat16)

    # Batch tiling: shrink the tile for tiny batches, pad B up to a tile multiple.
    tb = min(tile_b, _round_up(B, 8))
    Bp = _round_up(B, tb)
    if Bp != B:
        x_pad = jnp.pad(x_pad, ((0, Bp - B), (0, 0)))
    num_tiles = Bp // tb

    (w1, t1, w2, t2, w3, t3, w4, b4) = prepared_params

    def resident(shape):
        # Whole array, same block every grid step -> stays resident in VMEM.
        return pl.BlockSpec(shape, lambda i: tuple(0 for _ in shape))

    flops = 2 * Bp * (F_PAD * H1 + H1 * H2 + H2 * H3) + 2 * Bp * H3
    bytes_accessed = (x_pad.size * 2 + Bp * 4
                      + sum(int(p.size) * p.dtype.itemsize for p in prepared_params))

    out = pl.pallas_call(
        _mlp_kernel,
        out_shape=jax.ShapeDtypeStruct((Bp, 1), jnp.float32),
        grid=(num_tiles,),
        in_specs=[
            pl.BlockSpec((tb, F_PAD), lambda i: (i, 0)),           # x: tiled on batch
            resident(w1.shape), resident(t1.shape),
            resident(w2.shape), resident(t2.shape),
            resident(w3.shape), resident(t3.shape),
            resident(w4.shape), resident(b4.shape),
        ],
        out_specs=pl.BlockSpec((tb, 1), lambda i: (i, 0)),
        compiler_params=pltpu.CompilerParams(
            dimension_semantics=("parallel",)),                    # v7x megacore
        cost_estimate=pl.CostEstimate(flops=flops, transcendentals=0,
                                      bytes_accessed=bytes_accessed),
    )(x_pad, w1, t1, w2, t2, w3, t3, w4, b4)

    return out[:B]


def init_params(key, input_size=F_IN):
    """Raw params matching the PyTorch module's _initialize_weights (eval mode).

    Linear: kaiming_normal_(nonlinearity='relu') -> std = sqrt(2 / fan_in), bias = 0.
    BatchNorm1d: gamma = 1, beta = 0, running_mean = 0, running_var = 1.
    Weights stored transposed as (in, out) so forward is x @ W.
    """
    dims = [(input_size, H1), (H1, H2), (H2, H3), (H3, 1)]
    keys = jax.random.split(key, len(dims))
    layers = []
    for i, ((fan_in, fan_out), k) in enumerate(zip(dims, keys)):
        std = math.sqrt(2.0 / fan_in)
        w = jax.random.normal(k, (fan_in, fan_out), dtype=jnp.float32) * std
        b = jnp.zeros((fan_out,), dtype=jnp.float32)
        bn = None
        if i < 3:
            bn = dict(gamma=jnp.ones((fan_out,), jnp.float32),
                      beta=jnp.zeros((fan_out,), jnp.float32),
                      mean=jnp.zeros((fan_out,), jnp.float32),
                      var=jnp.ones((fan_out,), jnp.float32))
        layers.append((w, b, bn))
    return layers


def prepare_params(layers):
    """Fold eval-mode BN + Linear bias, pad fc1 rows, cast matmul weights to bf16."""
    prepared = []
    for i, (w, b, bn) in enumerate(layers):
        if bn is not None:
            scale = bn["gamma"] / jnp.sqrt(bn["var"] + BN_EPS)     # (out,)
            shift = (b - bn["mean"]) * scale + bn["beta"]          # (out,)
            w_f = w * scale[None, :]                               # fold scale into W
            if i == 0:
                w_f = jnp.pad(w_f, ((0, F_PAD - w_f.shape[0]), (0, 0)))
            prepared.append(w_f.astype(jnp.bfloat16))
            prepared.append(shift[None, :].astype(jnp.float32))
        else:
            # fc_out head: keep as a (1, 32) f32 row for the VPU/XLU reduction.
            prepared.append(w.reshape(1, -1).astype(jnp.float32))
            prepared.append(b.reshape(1, 1).astype(jnp.float32))
    return tuple(prepared)


def reference_forward(x, prepared_params):
    """Pure-JAX reference mirroring the kernel's bf16/f32 mixed precision."""
    (w1, t1, w2, t2, w3, t3, w4, b4) = prepared_params
    B = x.shape[0]
    x2d = x.reshape(B, -1).astype(jnp.float32)
    xp = jnp.pad(x2d, ((0, 0), (0, F_PAD - x2d.shape[1]))).astype(jnp.bfloat16)
    h = jnp.dot(xp, w1, preferred_element_type=jnp.float32)
    h = jnp.maximum(h + t1, 0.0)
    h = jnp.dot(h.astype(jnp.bfloat16), w2, preferred_element_type=jnp.float32)
    h = jnp.maximum(h + t2, 0.0)
    h = jnp.dot(h.astype(jnp.bfloat16), w3, preferred_element_type=jnp.float32)
    h = jnp.maximum(h + t3, 0.0)
    return jnp.sum(h * w4, axis=-1, keepdims=True) + b4


def reference_forward_f32(x, layers):
    """Full-f32 reference with the original eval-mode module semantics."""
    B = x.shape[0]
    h = x.reshape(B, -1).astype(jnp.float32)
    for (w, b, bn) in layers:
        h = h @ w + b[None, :]
        if bn is not None:
            h = ((h - bn["mean"]) / jnp.sqrt(bn["var"] + BN_EPS)
                 * bn["gamma"] + bn["beta"])
            h = jnp.maximum(h, 0.0)
    return h


if __name__ == "__main__":
    key = jax.random.PRNGKey(0)
    k_x, k_p = jax.random.split(key)

    B = 8
    x = jax.random.normal(k_x, (B, F_IN), dtype=jnp.float32)

    layers = init_params(k_p, input_size=F_IN)
    prepared = prepare_params(layers)

    out = mlp_classifier_forward(x, prepared, tile_b=512)
    out = jax.block_until_ready(out)
    assert out.shape == (B, 1), out.shape

    ref_mixed = reference_forward(x, prepared)
    assert jnp.allclose(out, ref_mixed, atol=1e-2, rtol=1e-2), (
        float(jnp.max(jnp.abs(out - ref_mixed))))

    ref_f32 = reference_forward_f32(x, layers)
    assert jnp.allclose(out, ref_f32, atol=1e-1, rtol=1e-1), (
        float(jnp.max(jnp.abs(out - ref_f32))))

    print("KERNEL_OK")
</pallas_src>

<mosaic_0001>
module attributes {stable_mosaic.version = 11 : i64} {
  func.func @_mlp_kernel(%arg0: i32, %arg1: memref<8x128xbf16, #tpu.memory_space<vmem>>, %arg2: memref<128x128xbf16, #tpu.memory_space<vmem>>, %arg3: memref<1x128xf32, #tpu.memory_space<vmem>>, %arg4: memref<128x64xbf16, #tpu.memory_space<vmem>>, %arg5: memref<1x64xf32, #tpu.memory_space<vmem>>, %arg6: memref<64x32xbf16, #tpu.memory_space<vmem>>, %arg7: memref<1x32xf32, #tpu.memory_space<vmem>>, %arg8: memref<1x32xf32, #tpu.memory_space<vmem>>, %arg9: memref<1x1xf32, #tpu.memory_space<vmem>>, %arg10: memref<8x1xf32, #tpu.memory_space<vmem>>) attributes {dimension_semantics = [#tpu.dimension_semantics<parallel>], iteration_bounds = array<i64: 1>, scalar_prefetch = 0 : i64, scratch_operands = 0 : i64, tpu.core_type = #tpu.core_type<tc>, window_params = [{transform_indices = @transform_0, window_bounds = array<i64: 8, 128>}, {pipeline_mode = #tpu.pipeline_mode<synchronous>, transform_indices = @transform_1, window_bounds = array<i64: 128, 128>}, {pipeline_mode = #tpu.pipeline_mode<synchronous>, transform_indices = @transform_2, window_bounds = array<i64: 1, 128>}, {pipeline_mode = #tpu.pipeline_mode<synchronous>, transform_indices = @transform_3, window_bounds = array<i64: 128, 64>}, {pipeline_mode = #tpu.pipeline_mode<synchronous>, transform_indices = @transform_4, window_bounds = array<i64: 1, 64>}, {pipeline_mode = #tpu.pipeline_mode<synchronous>, transform_indices = @transform_5, window_bounds = array<i64: 64, 32>}, {pipeline_mode = #tpu.pipeline_mode<synchronous>, transform_indices = @transform_6, window_bounds = array<i64: 1, 32>}, {pipeline_mode = #tpu.pipeline_mode<synchronous>, transform_indices = @transform_7, window_bounds = array<i64: 1, 32>}, {pipeline_mode = #tpu.pipeline_mode<synchronous>, transform_indices = @transform_8, window_bounds = array<i64: 1, 1>}, {transform_indices = @transform_9, window_bounds = array<i64: 8, 1>}]} {
    %c0 = arith.constant 0 : index
    %c0_0 = arith.constant 0 : index
    %0 = vector.load %arg1[%c0, %c0_0] : memref<8x128xbf16, #tpu.memory_space<vmem>>, vector<8x128xbf16>
    %c0_1 = arith.constant 0 : index
    %c0_2 = arith.constant 0 : index
    %1 = vector.load %arg2[%c0_1, %c0_2] : memref<128x128xbf16, #tpu.memory_space<vmem>>, vector<128x128xbf16>
    %cst = arith.constant dense<0.000000e+00> : vector<8x128xf32>
    %2 = tpu.matmul %0, %1, %cst {dimension_numbers = #tpu.dot_dimension_numbers<[1], [0], [0], [1], [0, 0, 1, 1], [], []>} : vector<8x128xbf16>, vector<128x128xbf16>, vector<8x128xf32> -> vector<8x128xf32>
    %c0_3 = arith.constant 0 : index
    %c0_4 = arith.constant 0 : index
    %3 = vector.load %arg3[%c0_3, %c0_4] : memref<1x128xf32, #tpu.memory_space<vmem>>, vector<1x128xf32>
    %4 = vector.broadcast %3 : vector<1x128xf32> to vector<8x128xf32>
    %5 = arith.addf %2, %4 : vector<8x128xf32>
    %cst_5 = arith.constant 0.000000e+00 : f32
    %6 = vector.broadcast %cst_5 : f32 to vector<8x128xf32>
    %7 = arith.maximumf %5, %6 : vector<8x128xf32>
    %8 = arith.truncf %7 : vector<8x128xf32> to vector<8x128xbf16>
    %c0_6 = arith.constant 0 : index
    %c0_7 = arith.constant 0 : index
    %9 = vector.load %arg4[%c0_6, %c0_7] : memref<128x64xbf16, #tpu.memory_space<vmem>>, vector<128x64xbf16>
    %cst_8 = arith.constant dense<0.000000e+00> : vector<8x64xf32>
    %10 = tpu.matmul %8, %9, %cst_8 {dimension_numbers = #tpu.dot_dimension_numbers<[1], [0], [0], [1], [0, 0, 1, 1], [], []>} : vector<8x128xbf16>, vector<128x64xbf16>, vector<8x64xf32> -> vector<8x64xf32>
    %c0_9 = arith.constant 0 : index
    %c0_10 = arith.constant 0 : index
    %11 = vector.load %arg5[%c0_9, %c0_10] : memref<1x64xf32, #tpu.memory_space<vmem>>, vector<1x64xf32>
    %12 = vector.broadcast %11 : vector<1x64xf32> to vector<8x64xf32>
    %13 = arith.addf %10, %12 : vector<8x64xf32>
    %cst_11 = arith.constant 0.000000e+00 : f32
    %14 = vector.broadcast %cst_11 : f32 to vector<8x64xf32>
    %15 = arith.maximumf %13, %14 : vector<8x64xf32>
    %16 = arith.truncf %15 : vector<8x64xf32> to vector<8x64xbf16>
    %c0_12 = arith.constant 0 : index
    %c0_13 = arith.constant 0 : index
    %17 = vector.load %arg6[%c0_12, %c0_13] : memref<64x32xbf16, #tpu.memory_space<vmem>>, vector<64x32xbf16>
    %cst_14 = arith.constant dense<0.000000e+00> : vector<8x32xf32>
    %18 = tpu.matmul %16, %17, %cst_14 {dimension_numbers = #tpu.dot_dimension_numbers<[1], [0], [0], [1], [0, 0, 1, 1], [], []>} : vector<8x64xbf16>, vector<64x32xbf16>, vector<8x32xf32> -> vector<8x32xf32>
    %c0_15 = arith.constant 0 : index
    %c0_16 = arith.constant 0 : index
    %19 = vector.load %arg7[%c0_15, %c0_16] : memref<1x32xf32, #tpu.memory_space<vmem>>, vector<1x32xf32>
    %20 = vector.broadcast %19 : vector<1x32xf32> to vector<8x32xf32>
    %21 = arith.addf %18, %20 : vector<8x32xf32>
    %cst_17 = arith.constant 0.000000e+00 : f32
    %22 = vector.broadcast %cst_17 : f32 to vector<8x32xf32>
    %23 = arith.maximumf %21, %22 : vector<8x32xf32>
    %c0_18 = arith.constant 0 : index
    %c0_19 = arith.constant 0 : index
    %24 = vector.load %arg8[%c0_18, %c0_19] : memref<1x32xf32, #tpu.memory_space<vmem>>, vector<1x32xf32>
    %25 = vector.broadcast %24 : vector<1x32xf32> to vector<8x32xf32>
    %26 = arith.mulf %23, %25 : vector<8x32xf32>
    %cst_20 = arith.constant dense<0.000000e+00> : vector<8xf32>
    %27 = vector.multi_reduction <add>, %26, %cst_20 [1] : vector<8x32xf32> to vector<8xf32>
    %28 = vector.shape_cast %27 : vector<8xf32> to vector<8x1xf32>
    %c0_21 = arith.constant 0 : index
    %c0_22 = arith.constant 0 : index
    %29 = vector.load %arg9[%c0_21, %c0_22] : memref<1x1xf32, #tpu.memory_space<vmem>>, vector<1x1xf32>
    %30 = vector.broadcast %29 : vector<1x1xf32> to vector<8x1xf32>
    %31 = arith.addf %28, %30 : vector<8x1xf32>
    %c0_23 = arith.constant 0 : index
    %c0_24 = arith.constant 0 : index
    %32 = vector.load %arg10[%c0_23, %c0_24] : memref<8x1xf32, #tpu.memory_space<vmem>>, vector<8x1xf32>
    tpu.vector_store %arg10[%c0_23, %c0_24], %31 {strides = array<i32>} : memref<8x1xf32, #tpu.memory_space<vmem>>, vector<8x1xf32>,
    return
  }
  func.func @transform_0(%arg0: i32) -> (i32, i32) {
    %c0_i32 = arith.constant 0 : i32
    %c0_i32_0 = arith.constant 0 : i32
    return %arg0, %c0_i32 : i32, i32
  }
  func.func @transform_1(%arg0: i32) -> (i32, i32) {
    %c0_i32 = arith.constant 0 : i32
    %c0_i32_0 = arith.constant 0 : i32
    %c0_i32_1 = arith.constant 0 : i32
    return %c0_i32, %c0_i32_0 : i32, i32
  }
  func.func @transform_2(%arg0: i32) -> (i32, i32) {
    %c0_i32 = arith.constant 0 : i32
    %c0_i32_0 = arith.constant 0 : i32
    %c0_i32_1 = arith.constant 0 : i32
    return %c0_i32, %c0_i32_0 : i32, i32
  }
  func.func @transform_3(%arg0: i32) -> (i32, i32) {
    %c0_i32 = arith.constant 0 : i32
    %c0_i32_0 = arith.constant 0 : i32
    %c0_i32_1 = arith.constant 0 : i32
    return %c0_i32, %c0_i32_0 : i32, i32
  }
  func.func @transform_4(%arg0: i32) -> (i32, i32) {
    %c0_i32 = arith.constant 0 : i32
    %c0_i32_0 = arith.constant 0 : i32
    %c0_i32_1 = arith.constant 0 : i32
    return %c0_i32, %c0_i32_0 : i32, i32
  }
  func.func @transform_5(%arg0: i32) -> (i32, i32) {
    %c0_i32 = arith.constant 0 : i32
    %c0_i32_0 = arith.constant 0 : i32
    %c0_i32_1 = arith.constant 0 : i32
    return %c0_i32, %c0_i32_0 : i32, i32
  }
  func.func @transform_6(%arg0: i32) -> (i32, i32) {
    %c0_i32 = arith.constant 0 : i32
    %c0_i32_0 = arith.constant 0 : i32
    %c0_i32_1 = arith.constant 0 : i32
    return %c0_i32, %c0_i32_0 : i32, i32
  }
  func.func @transform_7(%arg0: i32) -> (i32, i32) {
    %c0_i32 = arith.constant 0 : i32
    %c0_i32_0 = arith.constant 0 : i32
    %c0_i32_1 = arith.constant 0 : i32
    return %c0_i32, %c0_i32_0 : i32, i32
  }
  func.func @transform_8(%arg0: i32) -> (i32, i32) {
    %c0_i32 = arith.constant 0 : i32
    %c0_i32_0 = arith.constant 0 : i32
    %c0_i32_1 = arith.constant 0 : i32
    return %c0_i32, %c0_i32_0 : i32, i32
  }
  func.func @transform_9(%arg0: i32) -> (i32, i32) {
    %c0_i32 = arith.constant 0 : i32
    %c0_i32_0 = arith.constant 0 : i32
    return %arg0, %c0_i32 : i32, i32
  }
}

</mosaic_0001>

<bundles_post_ra>
// kernel: tpu_custom_call.1
= control target key start
LH: loop header
LB: loop body
LE: loop exit
PB: predicated region body
PF: predicated region fallthrough
CT: control target
= control target key end

     0   :  { %vm238_vm0 = vcmask 523264   ;;  %vm261_vm1 = vcmask 261120   ;;  %vm270_vm2 = vcmask 7168   ;;  %s513_s1 = inlined_call_operand.vmem [shape: bf16[128,128], index: 1, kind: input, shape index: {}]   ;;  %s514_s3 = inlined_call_operand.vmem [shape: bf16[128,64], index: 3, kind: input, shape index: {}]   ;;  %s515_s2 = inlined_call_operand.vmem [shape: f32[1,128], index: 2, kind: input, shape index: {}]   ;;  %s516_s0 = inlined_call_operand.vmem [shape: bf16[8,128], index: 0, kind: input, shape index: {}]   ;;  %s517_s4 = inlined_call_operand.vmem [shape: f32[1,64], index: 4, kind: input, shape index: {}]   ;;  %s518_s5 = inlined_call_operand.vmem [shape: bf16[64,32], index: 5, kind: input, shape index: {}]   ;;  %s519_s6 = inlined_call_operand.vmem [shape: f32[1,32], index: 6, kind: input, shape index: {}]   ;;  %s520_s7 = inlined_call_operand.vmem [shape: f32[1,32], index: 7, kind: input, shape index: {}]   ;;  %s521_s8 = inlined_call_operand.<no memory space> [shape: f32[1,1], index: 8, kind: input, shape index: {}]   ;;  %s522_s9 = inlined_call_operand.vmem [shape: f32[8,1], index: 9, kind: output, shape index: {}]  }
   0x1   :  { %v364_v0 = vld [vmem:[%s513_s1 + $0x38] sm:$0xff]  ;;  %v363_v1 = vld [vmem:[%s513_s1 + $0x30] sm:$0xff]  ;;  %v362_v4 = vld [vmem:[%s513_s1 + $0x28] sm:$0xff]  ;;  %v14_v33 = vstv %s521_s8 }
   0x2   :  { %104 = vmatpush.bf16.msra.mxu0 %v364_v0  ;;  %v372_v2 = vld [vmem:[%s514_s3 + $0x38] sm:$0xff]  ;;  %v371_v3 = vld [vmem:[%s514_s3 + $0x30] sm:$0xff]  ;;  %v370_v5 = vld [vmem:[%s514_s3 + $0x28] sm:$0xff]  ;;  %15 = vst [vmem:[#allocation2] sm:$0x1] %v14_v33 }
   0x3   :  { %187 = vmatpush.bf16.msra.mxu1 %v372_v2  ;;  %v361_v6 = vld [vmem:[%s513_s1 + $0x20] sm:$0xff]  ;;  %v360_v8 = vld [vmem:[%s513_s1 + $0x18] sm:$0xff]  ;;  %v359_v10 = vld [vmem:[%s513_s1 + $0x10] sm:$0xff] }
   0x4   :  { %v369_v7 = vld [vmem:[%s514_s3 + $0x20] sm:$0xff]  ;;  %v368_v9 = vld [vmem:[%s514_s3 + $0x18] sm:$0xff]  ;;  %v367_v11 = vld [vmem:[%s514_s3 + $0x10] sm:$0xff] }
   0x5   :  { %v358_v12 = vld [vmem:[%s513_s1 + $0x8] sm:$0xff]  ;;  %v357_v13 = vld [vmem:[%s513_s1] sm:$0xff]  ;;  %v376_v17 = vld [vmem:[%s518_s5 + $0x18] sm:$0xff] }
   0x6   :  { %105 = vmatpush.bf16.msra.mxu0 %v363_v1  ;;  %v35_v14 = vld [vmem:[%s516_s0] sm:$0xf]  ;;  %v366_v15 = vld [vmem:[%s514_s3 + $0x8] sm:$0xff]  ;;  %246 = vmatpush.bf16.msra.mxu2 %v376_v17  ;;  %v375_v18 = vld [vmem:[%s518_s5 + $0x10] sm:$0xff] }
   0x7   :  { %188 = vmatpush.bf16.msra.mxu1 %v371_v3  ;;  %v365_v16 = vld [vmem:[%s514_s3] sm:$0xff]  ;;  %v374_v25 = vld [vmem:[%s518_s5 + $0x8] sm:$0xff] }
   0x8   :  { %v377_v19 = vld [vmem:[%s515_s2] ss:$0 sm:$0xff] }
   0x9   :  { %v373_v26 = vld [vmem:[%s518_s5] sm:$0xff] }
   0xa   :  { %106 = vmatpush.bf16.msra.mxu0 %v362_v4  ;;  %247 = vmatpush.bf16.msra.mxu2 %v375_v18  ;;  %v378_v27 = vld [vmem:[%s517_s4] ss:$0 sm:$0xff] }
   0xb   :  { %189 = vmatpush.bf16.msra.mxu1 %v370_v5  ;;  %v379_v34 = vld [vmem:[%s519_s6] ss:$0 sm:$0xff] }
   0xc   :  { %v380_v37 = vld [vmem:[%s520_s7] ss:$0 sm:$0xff] }
   0xd   :  { %v381_v42 = vld [vmem:[#allocation2] ss:$0 sm:$0xff] }
   0xe   :  { %107 = vmatpush.bf16.msra.mxu0 %v361_v6  ;;  %248 = vmatpush.bf16.msra.mxu2 %v374_v25 }
   0xf   :  { %190 = vmatpush.bf16.msra.mxu1 %v369_v7 }
  0x12   :  { %108 = vmatpush.bf16.msra.mxu0 %v360_v8  ;;  %249 = vmatpush.bf16.msra.mxu2 %v373_v26 }
  0x13   :  { %191 = vmatpush.bf16.msra.mxu1 %v368_v9 }
  0x16   :  { %109 = vmatpush.bf16.msra.mxu0 %v359_v10 }
  0x17   :  { %192 = vmatpush.bf16.msra.mxu1 %v367_v11 }
  0x1a   :  { %110 = vmatpush.bf16.msra.mxu0 %v358_v12 }
  0x1b   :  { %193 = vmatpush.bf16.msra.mxu1 %v366_v15 }
  0x1e   :  { %111 = vmatpush.bf16.msra.mxu0 %v357_v13 }
  0x1f   :  { %194 = vmatpush.bf16.msra.mxu1 %v365_v16 }
  0x21   :  { %112 = vmatmul.bf16.vlgmr.msra.gmra.mxu0 %v35_v14 }
  0x9e   :  { %v113_v20 = vpop.f32.mrf.mxu0 }
  0x9f   :  { %v114_v21 = vadd.f32 %v377_v19, %v113_v20 }
  0xa1   :  { %v117_v22 = vmax.f32 %v114_v21, 0.0 }
  0xa3   :  { %v118_v23 = vpack.c.bf16 %v117_v22, %v117_v22 }
  0xa5   :  { %195 = vmatmul.bf16.vlgmr.msra.gmra.mxu1 %v118_v23 }
  0xa6   :  { %v115_v24 = vpop.f32.mrf.mxu0 }
 0x122   :  { %v196_v28 = vpop.f32.mrf.mxu1 }
 0x123   :  { %v197_v29 = vadd.f32 %v378_v27, %v196_v28 }
 0x125   :  { %v200_v30 = vmax.f32 %v197_v29, 0.0 }
 0x127   :  { %v201_v31 = vpack.c.bf16 %v200_v30, %v200_v30 }
 0x129   :  { %356 = vmatmul.msk.bf16.vlgmr.msra.gmra.mxu2 %vm238_vm0, %v201_v31 }
 0x12a   :  { %v198_v32 = vpop.f32.mrf.mxu1 }
 0x1ac   :  { %v251_v35 = vpop.f32.mrf.mxu2 }
 0x1ad   :  { %v252_v36 = vadd.f32 %v379_v34, %v251_v35 }
 0x1af   :  { %v255_v38 = vmax.f32 %v252_v36, 0.0 }
 0x1b1   :  { %v260_v39 = vmul.f32 %v380_v37, %v255_v38 }
 0x1b3   :  { %v262_v40 = vsel %vm261_vm1, %v260_v39, 0.0 }
 0x1b4   :  { %v253_v41 = vpop.f32.mrf.mxu2  ;;  %263 = vadd.xlane.f32.xlu0 %v262_v40 }
 0x227   :  { %v264_v43 = vpop.xlane.xlu0 %263 }
 0x228   :  { %v269_v44 = vadd.f32 %v381_v42, %v264_v43 }
 0x22a   :  { %271 = vst.msk [vmem:[%s522_s9] sm:$0xff] %vm270_vm2, %v269_v44 }

</bundles_post_ra>
